<compile_context>
chip_gen: v7x
topology: tpu7x:2x2x1
jax: 0.10.0
libtpu: 0.0.40
codegen_flags: <defaults>
</compile_context>

<pallas_src>
import functools

import jax
import jax.numpy as jnp
from jax.experimental import pallas as pl
from jax.experimental.pallas import tpu as pltpu


def _focal_loss_kernel(x_ref, t_ref, loss_ref, *, gamma):
    x = x_ref[...].astype(jnp.float32)            # (tile_n, C) f32 compute
    t = t_ref[...]                                # (tile_n, 1) int32 targets

    # Numerically stable softmax pieces.  One full-tile EUP exp pass only.
    m = jnp.max(x, axis=-1, keepdims=True)                         # XLU
    xm = x - m                                                     # VPU

    cls_idx = jax.lax.broadcasted_iota(jnp.int32, x.shape, 1)
    onehot = cls_idx == t                                          # VPU

    # Exact target logit term (no exp/log round trip, no saturation/clamp).
    xt_minus_m = jnp.sum(jnp.where(onehot, xm, 0.0), axis=-1, keepdims=True)

    e = jnp.exp(xm)                                                # EUP
    sumexp = jnp.sum(e, axis=-1, keepdims=True)                    # XLU
    tgt_e = jnp.sum(jnp.where(onehot, e, 0.0), axis=-1, keepdims=True)

    ce = jnp.log(sumexp) - xt_minus_m              # == lse - x_target (exact)
    # p == exp(-ce); reuse the existing exp instead of a second EUP exp pass.
    p = tgt_e * pl.reciprocal(sumexp, approx=(gamma <= 1.0))
    one_minus_p = jnp.maximum(1.0 - p, 0.0)        # guard approx-recip drift

    if gamma == 0.0:
        w = jnp.ones_like(one_minus_p)
    elif gamma == 1.0:                             # module default: one VPU mul
        w = one_minus_p
    elif gamma == 2.0:                             # canonical focal setting
        w = one_minus_p * one_minus_p
    elif float(gamma).is_integer() and 0.0 < gamma <= 8.0:
        w = one_minus_p
        for _ in range(int(gamma) - 1):
            w = w * one_minus_p
    else:                                          # fractional gamma (rare)
        w = jnp.power(one_minus_p, gamma)

    loss_ref[...] = (w * ce).astype(loss_ref.dtype)   # (tile_n, 1) per-row loss


def focal_loss(logits: jax.Array, targets: jax.Array, *, gamma: float = 1.0,
               tile_n: int | None = None) -> jax.Array:
    """logits: (N, C) float (f32 or bf16); targets: (N,) int. Returns scalar f32."""
    n, c = logits.shape
    itemsize = jnp.dtype(logits.dtype).itemsize
    n_pad8 = ((n + 7) // 8) * 8

    if tile_n is None:
        # Keep the double-buffered (logits + targets + out) tile set ~<= 8 MiB:
        # big enough to amortize the ~0.35 us per-grid-step overhead, small
        # enough for the 32 MiB scoped-VMEM limit on every TPU generation.
        budget = 8 * 1024 * 1024
        tile_n = budget // (2 * (c * itemsize + 8))
        tile_n = min(tile_n, 8192)
    tile_n = int(max(8, min(((tile_n + 7) // 8) * 8, n_pad8)))
    num_tiles = pl.cdiv(n, tile_n)

    t2d = targets.astype(jnp.int32).reshape(n, 1)
    kernel = functools.partial(_focal_loss_kernel, gamma=float(gamma))

    per_row = pl.pallas_call(
        kernel,
        out_shape=jax.ShapeDtypeStruct((n, 1), jnp.float32),
        grid=(num_tiles,),
        in_specs=[
            pl.BlockSpec((tile_n, c), lambda i: (i, 0)),   # logits tile (VMEM)
            pl.BlockSpec((tile_n, 1), lambda i: (i, 0)),   # targets tile (VMEM)
        ],
        out_specs=pl.BlockSpec((tile_n, 1), lambda i: (i, 0)),  # per-row loss
        compiler_params=pltpu.CompilerParams(
            # Every tile writes its own output block -> safe to parallelize
            # across TensorCores on v7x; no-op on single-TC v5e/v6e.
            dimension_semantics=("parallel",),
            vmem_limit_bytes=32 * 1024 * 1024,
        ),
    )(logits, t2d)

    # Tiny final reduction (N f32 values) done by XLA in the wrapper.
    return jnp.sum(per_row)


if __name__ == "__main__":
    key = jax.random.PRNGKey(0)
    k_logits, k_tgt = jax.random.split(key)

    N, NUM_CLASSES = 200, 80     # a batch of RoI proposals x 80 classes
    GAMMA = 1.0                  # module default
    logits = jax.random.normal(k_logits, (N, NUM_CLASSES), dtype=jnp.float32)
    targets = jax.random.randint(k_tgt, (N,), 0, NUM_CLASSES, dtype=jnp.int32)

    # tile_n=128 -> grid of 2 tiles; last tile (72 valid rows) exercises the
    # partial-block write-back path.
    loss = focal_loss(logits, targets, gamma=GAMMA, tile_n=128)
    jax.block_until_ready(loss)

    # Pure-JAX reference (same math as torch.nn.functional.cross_entropy).
    lse = jax.nn.logsumexp(logits.astype(jnp.float32), axis=-1)
    ce = lse - logits[jnp.arange(N), targets].astype(jnp.float32)
    p = jnp.exp(-ce)
    ref = jnp.sum((1.0 - p) ** GAMMA * ce)

    # Tolerance accounts for the approx EUP reciprocal used for p.
    assert jnp.allclose(loss, ref, rtol=5e-3, atol=1e-2), (loss, ref)

    print("KERNEL_OK")
</pallas_src>

<mosaic_0001>
module attributes {stable_mosaic.version = 11 : i64} {
  func.func @_focal_loss_kernel(%arg0: i32, %arg1: memref<128x80xf32, #tpu.memory_space<vmem>>, %arg2: memref<128x1xi32, #tpu.memory_space<vmem>>, %arg3: memref<128x1xf32, #tpu.memory_space<vmem>>) attributes {dimension_semantics = [#tpu.dimension_semantics<parallel>], iteration_bounds = array<i64: 2>, scalar_prefetch = 0 : i64, scratch_operands = 0 : i64, tpu.core_type = #tpu.core_type<tc>, window_params = [{transform_indices = @transform_0, window_bounds = array<i64: 128, 80>}, {transform_indices = @transform_1, window_bounds = array<i64: 128, 1>}, {transform_indices = @transform_2, window_bounds = array<i64: 128, 1>}]} {
    %c0 = arith.constant 0 : index
    %c0_0 = arith.constant 0 : index
    %0 = vector.load %arg1[%c0, %c0_0] : memref<128x80xf32, #tpu.memory_space<vmem>>, vector<128x80xf32>
    %c0_1 = arith.constant 0 : index
    %c0_2 = arith.constant 0 : index
    %1 = vector.load %arg2[%c0_1, %c0_2] : memref<128x1xi32, #tpu.memory_space<vmem>>, vector<128x1xi32>
    %cst = arith.constant dense<0xFF800000> : vector<128xf32>
    %2 = vector.multi_reduction <maximumf>, %0, %cst [1] : vector<128x80xf32> to vector<128xf32>
    %3 = vector.shape_cast %2 : vector<128xf32> to vector<128x1xf32>
    %4 = vector.broadcast %3 : vector<128x1xf32> to vector<128x80xf32>
    %5 = arith.subf %0, %4 : vector<128x80xf32>
    %6 = tpu.iota {dimensions = array<i32: 1>} : vector<128x80xi32>
    %7 = vector.broadcast %1 : vector<128x1xi32> to vector<128x80xi32>
    %8 = arith.cmpi eq, %6, %7 : vector<128x80xi32>
    %cst_3 = arith.constant 0.000000e+00 : f32
    %9 = vector.broadcast %cst_3 : f32 to vector<128x80xf32>
    %10 = arith.select %8, %5, %9 : vector<128x80xi1>, vector<128x80xf32>
    %cst_4 = arith.constant dense<0.000000e+00> : vector<128xf32>
    %11 = vector.multi_reduction <add>, %10, %cst_4 [1] : vector<128x80xf32> to vector<128xf32>
    %12 = vector.shape_cast %11 : vector<128xf32> to vector<128x1xf32>
    %13 = math.exp %5 : vector<128x80xf32>
    %cst_5 = arith.constant dense<0.000000e+00> : vector<128xf32>
    %14 = vector.multi_reduction <add>, %13, %cst_5 [1] : vector<128x80xf32> to vector<128xf32>
    %15 = vector.shape_cast %14 : vector<128xf32> to vector<128x1xf32>
    %cst_6 = arith.constant 0.000000e+00 : f32
    %16 = vector.broadcast %cst_6 : f32 to vector<128x80xf32>
    %17 = arith.select %8, %13, %16 : vector<128x80xi1>, vector<128x80xf32>
    %cst_7 = arith.constant dense<0.000000e+00> : vector<128xf32>
    %18 = vector.multi_reduction <add>, %17, %cst_7 [1] : vector<128x80xf32> to vector<128xf32>
    %19 = vector.shape_cast %18 : vector<128xf32> to vector<128x1xf32>
    %20 = math.log %15 : vector<128x1xf32>
    %21 = arith.subf %20, %12 : vector<128x1xf32>
    %22 = tpu.reciprocal %15 {approx = true} : vector<128x1xf32> -> vector<128x1xf32>
    %23 = arith.mulf %19, %22 : vector<128x1xf32>
    %cst_8 = arith.constant 1.000000e+00 : f32
    %24 = vector.broadcast %cst_8 : f32 to vector<128x1xf32>
    %25 = arith.subf %24, %23 : vector<128x1xf32>
    %cst_9 = arith.constant 0.000000e+00 : f32
    %26 = vector.broadcast %cst_9 : f32 to vector<128x1xf32>
    %27 = arith.maximumf %25, %26 : vector<128x1xf32>
    %28 = arith.mulf %27, %21 : vector<128x1xf32>
    %c0_10 = arith.constant 0 : index
    %c0_11 = arith.constant 0 : index
    %29 = vector.load %arg3[%c0_10, %c0_11] : memref<128x1xf32, #tpu.memory_space<vmem>>, vector<128x1xf32>
    tpu.vector_store %arg3[%c0_10, %c0_11], %28 {strides = array<i32>} : memref<128x1xf32, #tpu.memory_space<vmem>>, vector<128x1xf32>,
    return
  }
  func.func @transform_0(%arg0: i32) -> (i32, i32) {
    %c0_i32 = arith.constant 0 : i32
    %c0_i32_0 = arith.constant 0 : i32
    return %arg0, %c0_i32 : i32, i32
  }
  func.func @transform_1(%arg0: i32) -> (i32, i32) {
    %c0_i32 = arith.constant 0 : i32
    %c0_i32_0 = arith.constant 0 : i32
    return %arg0, %c0_i32 : i32, i32
  }
  func.func @transform_2(%arg0: i32) -> (i32, i32) {
    %c0_i32 = arith.constant 0 : i32
    %c0_i32_0 = arith.constant 0 : i32
    return %arg0, %c0_i32 : i32, i32
  }
}

</mosaic_0001>

<bundles_post_ra>
// kernel: tpu_custom_call.1
= control target key start
LH: loop header
LB: loop body
LE: loop exit
PB: predicated region body
PF: predicated region fallthrough
CT: control target
= control target key end

     0   :  { %s1330_s9 = smov 0   ;;  %s1332_s10 = smov 0   ;;  %s2010_s0 = inlined_call_operand.vmem [shape: f32[200,80], index: 0, kind: input, shape index: {}]   ;;  %s2011_s1 = inlined_call_operand.vmem [shape: s32[200,1], index: 1, kind: input, shape index: {}]   ;;  %s2012_s2 = inlined_call_operand.vmem [shape: f32[200,1], index: 2, kind: output, shape index: {}]  }
   0x1   :  { %s1334_s11 = smov 0  }
   0x2 LB: > { %s1343_s12 = sadd.s32 4294967295, %s1280_s11   ;;  %s1345_s13 = sadd.s32 1, %s1280_s11   ;;  %s1280_s11 = sphi %s1334_s11, %s2019_s11   ;;  %s1276_s10 = sphi %s1332_s10, %s2018_s10   ;;  %s1272_s9 = sphi %s1330_s9, %s2017_s9  }
   0x3   : > { %s68_s14 = ssub.s32 %s1280_s11, %s1345_s13  ;;  %s71_s15 = sadd.s32 1, %s1276_s10 }
   0x4   : > { %p69_p0 = scmp.eq.s32.totalorder %s68_s14, 0  ;;  %p81_p1 = scmp.ne.s32.totalorder %s1276_s10, %s1272_s9 }
   0x5   : > { %p82_p2 = scmp.eq.s32.totalorder %s1343_s12, 1  ;;  %p1013_p3 = scmp.ge.s32.totalorder %s1280_s11, 1 }
   0x6   : > { %s1353_s16 = scalar_select %p69_p0, %s1276_s10, %s71_s15  }
   0x7   : > { %p1355_p4 = por %p82_p2, %p81_p1  ;;  %p140_p5 = scmp.lt.s32.totalorder %s1280_s11, 3 }
   0x9   : > { %p141_p6 = pnand %p1013_p3, %p140_p5 }
   0xa   : > { %s1360_s18 = sshll.u32 (!%p141_p6), %s1343_s12, 4  ;;  %v1314_v0 = vmov (!%p141_p6), 0   ;;  %vm239_vm0 = vcmask (!%p141_p6), 654336   ;;  %s171_s27 = sand.u32 (!%p141_p6), 1, %s1272_s9  }
   0xb   : > { %144 = sbr.rel (%p141_p6) target bundleno = 493 (0x1ed), region = 28  ;;  %p179_p7 = scmp.lt.s32.totalorder (!%p141_p6), %s1360_s18, 24  ;;  %1129 = vset.pattern.permute.xlu1 (!%p141_p6), %v1314_v0  ;;  %1128 = vset.pattern.permute.xlu0 (!%p141_p6), %v1314_v0 }
   0xc   : > { %s1014_s28 = sshll.u32 (!%p141_p6), %s171_s27, 7 }
   0xd   : > { %s1835_s29 = scalar_lea.vmem (!%p141_p6), [#allocation2], %s1014_s28  }
  0x12   : > { %s1364_s19 = scalar_select %p179_p7, %s1360_s18, 24 }
  0x13   : > { %s731_s30 = ssub.s32 (%p1355_p4), 25, %s1360_s18  ;;  %s1036_s3 = sshll.u32 (%p1355_p4), %s1343_s12, 7 }
  0x14   : > { %s1016_s20 = sshll.u32 %s1364_s19, 3  ;;  %p732_p8 = scmp.lt.s32.totalorder (%p1355_p4), %s731_s30, 16 }
  0x15   : > { %s1372_s23 = scalar_lea.vmem %s2010_s0, %s1016_s20  ;;  %s1459_s26 = scalar_lea.vmem %s2011_s1, %s1016_s20 }
  0x16   : > { %v1375_v1 = vld [vmem:[%s1372_s23 + $0x10] sm:$0xff]  ;;  %v1378_v2 = vld [vmem:[%s1372_s23] sm:$0xff]  ;;  %v1381_v3 = vld [vmem:[%s1372_s23 + $0x18] sm:$0xff]  ;;  %s1917_s6 = scalar_lea.vmem (%p1355_p4), %s2012_s2, %s1036_s3  }
  0x17   : > { %v246_v4 = vsel %vm239_vm0, %v1375_v1, -inf  ;;  %v240_v5 = vsel %vm239_vm0, %v1378_v2, -inf  ;;  %v1388_v6 = vld [vmem:[%s1372_s23 + $0x8] sm:$0xff]  ;;  %v249_v7 = vsel %vm239_vm0, %v1381_v3, -inf  ;;  %v1398_v10 = vld [vmem:[%s1372_s23 + $0x20] sm:$0xff]  ;;  %v1405_v13 = vld [vmem:[%s1372_s23 + $0x38] sm:$0xff] }
  0x18   : > { %247 = vmax.xlane.f32.xlu1 %v246_v4  ;;  %241 = vmax.xlane.f32.xlu0 %v240_v5  ;;  %v243_v8 = vsel %vm239_vm0, %v1388_v6, -inf  ;;  %v1395_v9 = vld [vmem:[%s1372_s23 + $0x28] sm:$0xff]  ;;  %v252_v12 = vsel %vm239_vm0, %v1398_v10, -inf  ;;  %v1408_v14 = vld [vmem:[%s1372_s23 + $0x30] sm:$0xff]  ;;  %v261_v15 = vsel %vm239_vm0, %v1405_v13, -inf  ;;  %v1418_v18 = vld [vmem:[%s1372_s23 + $0x40] sm:$0xff]  ;;  %v304_v5 = vlaneseq }
  0x19   : > { %v255_v11 = vsel %vm239_vm0, %v1395_v9, -inf  ;;  %v258_v16 = vsel %vm239_vm0, %v1408_v14, -inf  ;;  %v1415_v17 = vld [vmem:[%s1372_s23 + $0x48] sm:$0xff]  ;;  %v264_v20 = vsel %vm239_vm0, %v1418_v18, -inf  ;;  %v1425_v21 = vld [vmem:[%s1372_s23 + $0x58] sm:$0xff]  ;;  %v1428_v22 = vld [vmem:[%s1372_s23 + $0x50] sm:$0xff] }
  0x1a   : > { %v267_v19 = vsel %vm239_vm0, %v1415_v17, -inf  ;;  %v273_v23 = vsel %vm239_vm0, %v1425_v21, -inf  ;;  %v270_v24 = vsel %vm239_vm0, %v1428_v22, -inf  ;;  %v1435_v25 = vld [vmem:[%s1372_s23 + $0x68] sm:$0xff]  ;;  %v1438_v26 = vld [vmem:[%s1372_s23 + $0x60] sm:$0xff]  ;;  %v1445_v29 = vld [vmem:[%s1372_s23 + $0x78] sm:$0xff] }
  0x1b   : > { %v279_v27 = vsel %vm239_vm0, %v1435_v25, -inf  ;;  %v276_v28 = vsel %vm239_vm0, %v1438_v26, -inf  ;;  %v1448_v30 = vld [vmem:[%s1372_s23 + $0x70] sm:$0xff]  ;;  %v285_v31 = vsel %vm239_vm0, %v1445_v29, -inf  ;;  %v224_v33 = vld [vmem:[%s1459_s26 + $0x8] sm:$0xff]  ;;  %v223_v35 = vld [vmem:[%s1459_s26] sm:$0xff] }
  0x1c   : > { %250 = vmax.xlane.f32.xlu1 %v249_v7  ;;  %244 = vmax.xlane.f32.xlu0 %v243_v8  ;;  %v282_v32 = vsel %vm239_vm0, %v1448_v30, -inf  ;;  %v225_v34 = vld [vmem:[%s1459_s26 + $0x10] sm:$0xff]  ;;  %v226_v36 = vld [vmem:[%s1459_s26 + $0x18] sm:$0xff]  ;;  %v232_v37 = vld [vmem:[%s1459_s26 + $0x48] sm:$0xff] }
  0x1d   : > { %v227_v38 = vld [vmem:[%s1459_s26 + $0x20] sm:$0xff]  ;;  %v234_v39 = vld [vmem:[%s1459_s26 + $0x58] sm:$0xff]  ;;  %v228_v40 = vld [vmem:[%s1459_s26 + $0x28] sm:$0xff] }
  0x1e   : > { %v236_v41 = vld [vmem:[%s1459_s26 + $0x68] sm:$0xff]  ;;  %v229_v42 = vld [vmem:[%s1459_s26 + $0x30] sm:$0xff]  ;;  %v238_v43 = vld [vmem:[%s1459_s26 + $0x78] sm:$0xff] }
  0x1f   : > { %v230_v44 = vld [vmem:[%s1459_s26 + $0x38] sm:$0xff]  ;;  %v231_v45 = vld [vmem:[%s1459_s26 + $0x40] sm:$0xff]  ;;  %v233_v46 = vld [vmem:[%s1459_s26 + $0x50] sm:$0xff] }
  0x20   : > { %256 = vmax.xlane.f32.xlu1 %v255_v11  ;;  %253 = vmax.xlane.f32.xlu0 %v252_v12  ;;  %v235_v47 = vld [vmem:[%s1459_s26 + $0x60] sm:$0xff]  ;;  %v237_v48 = vld [vmem:[%s1459_s26 + $0x70] sm:$0xff] }
  0x24   : > { %262 = vmax.xlane.f32.xlu1 %v261_v15  ;;  %259 = vmax.xlane.f32.xlu0 %v258_v16  ;;  %v1493_v16 = vand.u32 127, %v304_v5 }
  0x28   : > { %268 = vmax.xlane.f32.xlu1 %v267_v19  ;;  %265 = vmax.xlane.f32.xlu0 %v264_v20 }
  0x2c   : > { %274 = vmax.xlane.f32.xlu1 %v273_v23  ;;  %271 = vmax.xlane.f32.xlu0 %v270_v24 }
  0x30   : > { %280 = vmax.xlane.f32.xlu1 %v279_v27  ;;  %277 = vmax.xlane.f32.xlu0 %v276_v28 }
  0x34   : > { %286 = vmax.xlane.f32.xlu1 %v285_v31  ;;  %283 = vmax.xlane.f32.xlu0 %v282_v32 }
  0x45   : > { %310 = vperm.xlu1 %1129, %v224_v33  }
  0x49   : > { %313 = vperm.xlu1 %1129, %v225_v34  }
  0x4a   : > { %307 = vperm.xlu0 %1128, %v223_v35  }
  0x4d   : > { %316 = vperm.xlu1 %1129, %v226_v36  }
  0x4e   : > { %334 = vperm.xlu0 %1128, %v232_v37  }
  0x51   : > { %319 = vperm.xlu1 %1129, %v227_v38  }
  0x52   : > { %340 = vperm.xlu0 %1128, %v234_v39  }
  0x55   : > { %322 = vperm.xlu1 %1129, %v228_v40  }
  0x56   : > { %346 = vperm.xlu0 %1128, %v236_v41  }
  0x59   : > { %325 = vperm.xlu1 %1129, %v229_v42  }
  0x5a   : > { %352 = vperm.xlu0 %1128, %v238_v43  }
  0x5d   : > { %328 = vperm.xlu1 %1129, %v230_v44  }
  0x61   : > { %331 = vperm.xlu1 %1129, %v231_v45  }
  0x65   : > { %337 = vperm.xlu1 %1129, %v233_v46  }
  0x69   : > { %343 = vperm.xlu1 %1129, %v235_v47  }
  0x6d   : > { %349 = vperm.xlu1 %1129, %v237_v48  }
  0xa5   : > { %v248_v49 = vpop.xlane.xlu1 %247  ;;  %v242_v50 = vpop.xlane.xlu0 %241 }
  0xa6   : > { %v288_v61 = vsub.f32 %v1378_v2, %v242_v50  ;;  %v290_v0 = vsub.f32 %v1375_v1, %v248_v49 }
  0xa8   : > { %v434_v4 = vmul.f32 1.442695, %v288_v61 }
  0xa9   : > { %v251_v51 = vpop.xlane.xlu1 %250  ;;  %v245_v52 = vpop.xlane.xlu0 %244 }
  0xaa   : > { %v289_v62 = vsub.f32 %v1388_v6, %v245_v52  ;;  %v1483_v7 = vsub.f32 %v1381_v3, %v251_v51  ;;  %v438_v6 = vmul.f32 1.442695, %v290_v0  ;;  %1130 = vpow2.f32 %v434_v4 }
  0xac   : > { %v436_v8 = vmul.f32 1.442695, %v289_v62  ;;  %v440_v1 = vmul.f32 1.442695, %v1483_v7 }
  0xad   : > { %v257_v53 = vpop.xlane.xlu1 %256  ;;  %v254_v54 = vpop.xlane.xlu0 %253 }
  0xae   : > { %v1486_v12 = vsub.f32 %v1395_v9, %v257_v53  ;;  %v1489_v15 = vsub.f32 %v1398_v10, %v254_v54  ;;  %1132 = vpow2.f32 %v436_v8 }
  0xaf   : > { %1134 = vpow2.f32 %v438_v6 }
  0xb0   : > { %v444_v3 = vmul.f32 1.442695, %v1486_v12  ;;  %v442_v19 = vmul.f32 1.442695, %v1489_v15  ;;  %1136 = vpow2.f32 %v440_v1 }
  0xb1   : > { %v263_v55 = vpop.xlane.xlu1 %262  ;;  %v260_v56 = vpop.xlane.xlu0 %259 }
  0xb2   : > { %v1503_v10 = vsub.f32 %v1405_v13, %v263_v55  ;;  %v1508_v23 = vsub.f32 %v1408_v14, %v260_v56  ;;  %1138 = vpow2.f32 %v444_v3 }
  0xb3   : > { %1140 = vpow2.f32 %v442_v19 }
  0xb4   : > { %v448_v31 = vmul.f32 1.442695, %v1503_v10  ;;  %v446_v14 = vmul.f32 1.442695, %v1508_v23  ;;  %v1536_v35 = vpop.eup %1130 }
  0xb5   : > { %v269_v57 = vpop.xlane.xlu1 %268  ;;  %v266_v58 = vpop.xlane.xlu0 %265  ;;  %v466_v46 = vsel %vm239_vm0, %v1536_v35, 0.0 }
  0xb6   : > { %v1520_v32 = vsub.f32 %v1415_v17, %v269_v57  ;;  %v1528_v33 = vsub.f32 %v1418_v18, %v266_v58  ;;  %1142 = vpow2.f32 %v448_v31 }
  0xb7   : > { %1144 = vpow2.f32 %v446_v14 }
  0xb8   : > { %v1540_v38 = vpop.eup %1132  ;;  %v452_v40 = vmul.f32 1.442695, %v1520_v32  ;;  %v450_v42 = vmul.f32 1.442695, %v1528_v33 }
  0xb9   : > { %v275_v59 = vpop.xlane.xlu1 %274  ;;  %v272_v60 = vpop.xlane.xlu0 %271  ;;  %v469_v45 = vsel %vm239_vm0, %v1540_v38, 0.0 }
  0xba   : > { %v1548_v41 = vsub.f32 %v1425_v21, %v275_v59  ;;  %v1552_v43 = vsub.f32 %v1428_v22, %v272_v60  ;;  %v1554_v44 = vpop.eup %1134  ;;  %1146 = vpow2.f32 %v452_v40 }
  0xbb   : > { %v1560_v47 = vpop.eup %1136  ;;  %1148 = vpow2.f32 %v450_v42  ;;  %v472_v55 = vsel %vm239_vm0, %v1554_v44, 0.0 }
  0xbc   : > { %v1566_v49 = vpop.eup %1138  ;;  %v456_v22 = vmul.f32 1.442695, %v1548_v41  ;;  %v454_v52 = vmul.f32 1.442695, %v1552_v43  ;;  %v475_v54 = vsel %vm239_vm0, %v1560_v47, 0.0 }
  0xbd   : > { %v1479_v63 = vpop.xlane.xlu1 %280  ;;  %v278_v11 = vpop.xlane.xlu0 %277 }
  0xbe   : > { %v301_v50 = vsub.f32 %v1435_v25, %v1479_v63  ;;  %v1571_v51 = vpop.eup %1140  ;;  %v300_v53 = vsub.f32 %v1438_v26, %v278_v11  ;;  %1150 = vpow2.f32 %v456_v22 }
  0xbf   : > { %1152 = vpow2.f32 %v454_v52 }
  0xc0   : > { %v460_v25 = vmul.f32 1.442695, %v301_v50  ;;  %v458_v26 = vmul.f32 1.442695, %v300_v53 }
  0xc1   : > { %v1491_v2 = vpop.xlane.xlu1 %286  ;;  %v1498_v20 = vpop.xlane.xlu0 %283 }
  0xc2   : > { %v303_v58 = vsub.f32 %v1445_v29, %v1491_v2  ;;  %v302_v59 = vsub.f32 %v1448_v30, %v1498_v20  ;;  %v478_v29 = vsel %vm239_vm0, %v1571_v51, 0.0  ;;  %1154 = vpow2.f32 %v460_v25 }
  0xc3   : > { %1156 = vpow2.f32 %v458_v26 }
  0xc4   : > { %v464_v4 = vmul.f32 1.442695, %v303_v58  ;;  %v462_v5 = vmul.f32 1.442695, %v302_v59 }
  0xc5   : > { %v1500_v9 = vpop.permute.xlu1 %310 }
  0xc6   : > { %vm355_vm1 = vcmp.eq.s32.totalorder %v1493_v16, %v1500_v9  ;;  %1158 = vpow2.f32 %v464_v4 }
  0xc7   : > { %v371_v24 = vsel %vm355_vm1, %v289_v62, 0.0  ;;  %v481_v62 = vsel %vm239_vm0, %v1566_v49, 0.0  ;;  %1160 = vpow2.f32 %v462_v5  ;;  %v515_v25 = vsel %vm355_vm1, %v1540_v38, 0.0 }
  0xc8   : > { %v389_v27 = vsel %vm239_vm0, %v371_v24, 0.0  ;;  %v533_v26 = vsel %vm239_vm0, %v515_v25, 0.0 }
  0xc9   : > { %v1514_v28 = vpop.permute.xlu1 %313  ;;  %390 = vadd.xlane.f32.xlu0 %v389_v27  ;;  %v1516_v13 = vpop.permute.xlu0 %307 }
  0xca   : > { %vm356_vm2 = vcmp.eq.s32.totalorder %v1493_v16, %v1514_v28  ;;  %vm354_vm3 = vcmp.eq.s32.totalorder %v1493_v16, %v1516_v13 }
  0xcb   : > { %v372_v34 = vsel %vm356_vm2, %v290_v0, 0.0  ;;  %v370_v17 = vsel %vm354_vm3, %v288_v61, 0.0  ;;  %v1594_v61 = vpop.eup %1142  ;;  %v516_v13 = vsel %vm356_vm2, %v1554_v44, 0.0 }
  0xcc   : > { %v392_v36 = vsel %vm239_vm0, %v372_v34, 0.0  ;;  %v386_v37 = vsel %vm239_vm0, %v370_v17, 0.0  ;;  %v1600_v63 = vpop.eup %1144  ;;  %v487_v2 = vsel %vm239_vm0, %v1594_v61, 0.0  ;;  %v536_v38 = vsel %vm239_vm0, %v516_v13, 0.0 }
  0xcd   : > { %v1542_v39 = vpop.permute.xlu1 %316  ;;  %393 = vadd.xlane.f32.xlu0 %v392_v36  ;;  %387 = vadd.xlane.f32.xlu1 %v386_v37  ;;  %v1544_v18 = vpop.permute.xlu0 %334  ;;  %v484_v6 = vsel %vm239_vm0, %v1600_v63, 0.0 }
  0xce   : > { %v1613_v11 = vpop.eup %1146  ;;  %vm357_vm7 = vcmp.eq.s32.totalorder %v1493_v16, %v1542_v39  ;;  %vm363_vm13 = vcmp.eq.s32.totalorder %v1493_v16, %v1544_v18 }
  0xcf   : > { %v1619_v1 = vpop.eup %1148  ;;  %v493_v20 = vsel %vm239_vm0, %v1613_v11, 0.0  ;;  %v517_v9 = vsel %vm357_vm7, %v1560_v47, 0.0 }
  0xd0   : > { %v1623_v19 = vpop.eup %1150  ;;  %v490_v24 = vsel %vm239_vm0, %v1619_v1, 0.0 }
  0xd1   : > { %v1562_v48 = vpop.permute.xlu1 %319  ;;  %470 = vadd.xlane.f32.xlu0 %v469_v45  ;;  %467 = vadd.xlane.f32.xlu1 %v466_v46  ;;  %v1564_v21 = vpop.permute.xlu0 %340  ;;  %v499_v34 = vsel %vm239_vm0, %v1623_v19, 0.0 }
  0xd2   : > { %v1629_v27 = vpop.eup %1152  ;;  %vm358_vm9 = vcmp.eq.s32.totalorder %v1493_v16, %v1562_v48  ;;  %vm365_vm15 = vcmp.eq.s32.totalorder %v1493_v16, %v1564_v21 }
  0xd3   : > { %v1633_v14 = vpop.eup %1154  ;;  %v496_v17 = vsel %vm239_vm0, %v1629_v27, 0.0  ;;  %v518_v28 = vsel %vm358_vm9, %v1571_v51, 0.0 }
  0xd4   : > { %v1639_v36 = vpop.eup %1156  ;;  %v505_v42 = vsel %vm239_vm0, %v1633_v14, 0.0 }
  0xd5   : > { %v1579_v56 = vpop.permute.xlu1 %322  ;;  %476 = vadd.xlane.f32.xlu0 %v475_v54  ;;  %473 = vadd.xlane.f32.xlu1 %v472_v55  ;;  %v1581_v57 = vpop.permute.xlu0 %346  ;;  %v502_v45 = vsel %vm239_vm0, %v1639_v36, 0.0 }
  0xd6   : > { %vm367_vm4 = vcmp.eq.s32.totalorder %v1493_v16, %v1581_v57  ;;  %v1643_v40 = vpop.eup %1158  ;;  %vm359_vm10 = vcmp.eq.s32.totalorder %v1493_v16, %v1579_v56 }
  0xd7   : > { %v1592_v60 = vsel %vm367_vm4, %v301_v50, 0.0  ;;  %v1649_v46 = vpop.eup %1160  ;;  %v511_v52 = vsel %vm239_vm0, %v1643_v40, 0.0  ;;  %v519_v47 = vsel %vm359_vm10, %v1566_v49, 0.0 }
  0xd8   : > { %v508_v54 = vsel %vm239_vm0, %v1649_v46, 0.0  ;;  %v545_v44 = vsel %vm239_vm0, %v519_v47, 0.0  ;;  %v425_v18 = vsel %vm239_vm0, %v1592_v60, 0.0 }
  0xd9   : > { %v1602_v0 = vpop.permute.xlu1 %325  ;;  %482 = vadd.xlane.f32.xlu0 %v481_v62  ;;  %479 = vadd.xlane.f32.xlu1 %v478_v29  ;;  %v1604_v30 = vpop.permute.xlu0 %352 }
  0xda   : > { %vm369_vm5 = vcmp.eq.s32.totalorder %v1493_v16, %v1604_v30  ;;  %vm360_vm11 = vcmp.eq.s32.totalorder %v1493_v16, %v1602_v0  ;;  %v379_v0 = vsel %vm363_vm13, %v1520_v32, 0.0 }
  0xdb   : > { %v1611_v8 = vsel %vm369_vm5, %v303_v58, 0.0  ;;  %v520_v51 = vsel %vm360_vm11, %v1600_v63, 0.0  ;;  %v523_v63 = vsel %vm363_vm13, %v1613_v11, 0.0  ;;  %v525_v11 = vsel %vm365_vm15, %v1623_v19, 0.0 }
  0xdc   : > { %v548_v4 = vsel %vm239_vm0, %v520_v51, 0.0 }
  0xdd   : > { %v1621_v3 = vpop.permute.xlu1 %328  ;;  %488 = vadd.xlane.f32.xlu0 %v487_v2  ;;  %485 = vadd.xlane.f32.xlu1 %v484_v6  ;;  %v557_v2 = vsel %vm239_vm0, %v523_v63, 0.0 }
  0xde   : > { %vm361_vm12 = vcmp.eq.s32.totalorder %v1493_v16, %v1621_v3  ;;  %v413_v3 = vsel %vm239_vm0, %v379_v0, 0.0 }
  0xdf   : > { %v521_v49 = vsel %vm361_vm12, %v1594_v61, 0.0  ;;  %v377_v48 = vsel %vm361_vm12, %v1503_v10, 0.0 }
  0xe0   : > { %v551_v29 = vsel %vm239_vm0, %v521_v49, 0.0  ;;  %v407_v56 = vsel %vm239_vm0, %v377_v48, 0.0 }
  0xe1   : > { %v1631_v31 = vpop.permute.xlu1 %331  ;;  %494 = vadd.xlane.f32.xlu0 %v493_v20  ;;  %491 = vadd.xlane.f32.xlu1 %v490_v24  ;;  %v563_v20 = vsel %vm239_vm0, %v525_v11, 0.0 }
  0xe2   : > { %vm362_vm14 = vcmp.eq.s32.totalorder %v1493_v16, %v1631_v31  ;;  %v381_v31 = vsel %vm365_vm15, %v1548_v41, 0.0 }
  0xe3   : > { %v522_v61 = vsel %vm362_vm14, %v1619_v1, 0.0 }
  0xe4   : > { %v554_v5 = vsel %vm239_vm0, %v522_v61, 0.0 }
  0xe5   : > { %v1641_v37 = vpop.permute.xlu1 %337  ;;  %500 = vadd.xlane.f32.xlu0 %v499_v34  ;;  %497 = vadd.xlane.f32.xlu1 %v496_v17 }
  0xe6   : > { %vm364_vm1 = vcmp.eq.s32.totalorder %v1493_v16, %v1641_v37  ;;  %v431_v37 = vsel %vm239_vm0, %v1611_v8, 0.0 }
  0xe7   : > { %v524_v6 = vsel %vm364_vm1, %v1629_v27, 0.0  ;;  %v527_v27 = vsel %vm367_vm4, %v1633_v14, 0.0  ;;  %v373_v14 = vsel %vm357_vm7, %v1483_v7, 0.0  ;;  %v376_v7 = vsel %vm360_vm11, %v1508_v23, 0.0 }
  0xe8   : > { %v560_v1 = vsel %vm239_vm0, %v524_v6, 0.0  ;;  %v569_v17 = vsel %vm239_vm0, %v527_v27, 0.0  ;;  %v380_v10 = vsel %vm364_vm1, %v1552_v43, 0.0 }
  0xe9   : > { %v344_v22 = vpop.permute.xlu1 %343  ;;  %506 = vadd.xlane.f32.xlu0 %v505_v42  ;;  %503 = vadd.xlane.f32.xlu1 %v502_v45  ;;  %v374_v45 = vsel %vm358_vm9, %v1489_v15, 0.0  ;;  %v404_v15 = vsel %vm239_vm0, %v376_v7, 0.0 }
  0xea   : > { %vm366_vm6 = vcmp.eq.s32.totalorder %v1493_v16, %v344_v22  ;;  %v398_v30 = vsel %vm239_vm0, %v374_v45, 0.0  ;;  %v419_v22 = vsel %vm239_vm0, %v381_v31, 0.0 }
  0xeb   : > { %v1654_v50 = vsel %vm366_vm6, %v300_v53, 0.0  ;;  %v514_v53 = vsel %vm354_vm3, %v1536_v35, 0.0  ;;  %v539_v35 = vsel %vm239_vm0, %v517_v9, 0.0  ;;  %v526_v24 = vsel %vm366_vm6, %v1639_v36, 0.0 }
  0xec   : > { %v530_v62 = vsel %vm239_vm0, %v514_v53, 0.0  ;;  %v566_v34 = vsel %vm239_vm0, %v526_v24, 0.0  ;;  %v529_v36 = vsel %vm369_vm5, %v1643_v40, 0.0  ;;  %v375_v40 = vsel %vm359_vm10, %v1486_v12, 0.0 }
  0xed   : > { %v350_v55 = vpop.permute.xlu1 %349  ;;  %512 = vadd.xlane.f32.xlu0 %v511_v52  ;;  %509 = vadd.xlane.f32.xlu1 %v508_v54  ;;  %v575_v57 = vsel %vm239_vm0, %v529_v36, 0.0  ;;  %v401_v39 = vsel %vm239_vm0, %v375_v40, 0.0  ;;  %v378_v12 = vsel %vm362_vm14, %v1528_v33, 0.0  ;;  %v416_v33 = vsel %vm239_vm0, %v380_v10, 0.0 }
  0xee   : > { %vm368_vm8 = vcmp.eq.s32.totalorder %v1493_v16, %v350_v55  ;;  %v410_v23 = vsel %vm239_vm0, %v378_v12, 0.0  ;;  %v422_v32 = vsel %vm239_vm0, %v1654_v50, 0.0 }
  0xef   : > { %v1673_v58 = vsel %vm368_vm8, %v302_v59, 0.0  ;;  %v542_v59 = vsel %vm239_vm0, %v518_v28, 0.0  ;;  %v528_v19 = vsel %vm368_vm8, %v1649_v46, 0.0  ;;  %v395_v46 = vsel %vm239_vm0, %v373_v14, 0.0 }
  0xf0   : > { %v572_v42 = vsel %vm239_vm0, %v528_v19, 0.0  ;;  %v428_v43 = vsel %vm239_vm0, %v1673_v58, 0.0  ;;  %vm706_vm0 = vcmask 7168  }
  0xf1   : > { %534 = vadd.xlane.f32.xlu0 %v533_v26  ;;  %531 = vadd.xlane.f32.xlu1 %v530_v62 }
  0xf5   : > { %540 = vadd.xlane.f32.xlu0 %v539_v35  ;;  %537 = vadd.xlane.f32.xlu1 %v536_v38 }
  0xf9   : > { %546 = vadd.xlane.f32.xlu0 %v545_v44  ;;  %543 = vadd.xlane.f32.xlu1 %v542_v59 }
  0xfd   : > { %552 = vadd.xlane.f32.xlu0 %v551_v29  ;;  %549 = vadd.xlane.f32.xlu1 %v548_v4 }
 0x101   : > { %555 = vadd.xlane.f32.xlu1 %v554_v5  ;;  %558 = vadd.xlane.f32.xlu0 %v557_v2 }
 0x105   : > { %561 = vadd.xlane.f32.xlu1 %v560_v1  ;;  %564 = vadd.xlane.f32.xlu0 %v563_v20 }
 0x109   : > { %567 = vadd.xlane.f32.xlu1 %v566_v34  ;;  %570 = vadd.xlane.f32.xlu0 %v569_v17 }
 0x10d   : > { %573 = vadd.xlane.f32.xlu1 %v572_v42  ;;  %576 = vadd.xlane.f32.xlu0 %v575_v57 }
 0x111   : > { %396 = vadd.xlane.f32.xlu1 %v395_v46  ;;  %399 = vadd.xlane.f32.xlu0 %v398_v30 }
 0x115   : > { %402 = vadd.xlane.f32.xlu1 %v401_v39  ;;  %405 = vadd.xlane.f32.xlu0 %v404_v15 }
 0x119   : > { %408 = vadd.xlane.f32.xlu1 %v407_v56  ;;  %411 = vadd.xlane.f32.xlu0 %v410_v23 }
 0x11d   : > { %414 = vadd.xlane.f32.xlu1 %v413_v3  ;;  %417 = vadd.xlane.f32.xlu0 %v416_v33 }
 0x121   : > { %420 = vadd.xlane.f32.xlu1 %v419_v22  ;;  %423 = vadd.xlane.f32.xlu0 %v422_v32 }
 0x125   : > { %426 = vadd.xlane.f32.xlu1 %v425_v18  ;;  %429 = vadd.xlane.f32.xlu0 %v428_v43 }
 0x129   : > { %432 = vadd.xlane.f32.xlu1 %v431_v37 }
 0x156   : > { %v391_v16 = vpop.xlane.xlu0 %390 }
 0x15a   : > { %v388_v41 = vpop.xlane.xlu1 %387  ;;  %v394_v21 = vpop.xlane.xlu0 %393 }
 0x15e   : > { %v468_v52 = vpop.xlane.xlu1 %467  ;;  %v471_v54 = vpop.xlane.xlu0 %470 }
 0x15f   : > { %1162 = vlog2.f32 %v468_v52 }
 0x160   : > { %1164 = vlog2.f32 %v471_v54 }
 0x161   : > { %1166 = vrcp.f32 %v468_v52 }
 0x162   : > { %v474_v50 = vpop.xlane.xlu1 %473  ;;  %v477_v55 = vpop.xlane.xlu0 %476  ;;  %1168 = vrcp.f32 %v471_v54 }
 0x163   : > { %1170 = vlog2.f32 %v474_v50 }
 0x164   : > { %1172 = vrcp.f32 %v474_v50 }
 0x165   : > { %1174 = vlog2.f32 %v477_v55 }
 0x166   : > { %v480_v25 = vpop.xlane.xlu1 %479  ;;  %v483_v53 = vpop.xlane.xlu0 %482  ;;  %1176 = vrcp.f32 %v477_v55 }
 0x167   : > { %1178 = vlog2.f32 %v480_v25 }
 0x168   : > { %1180 = vrcp.f32 %v480_v25 }
 0x169   : > { %v1163_v28 = vpop.eup %1162  ;;  %1182 = vlog2.f32 %v483_v53 }
 0x16a   : > { %v1814_v26 = vpop.xlane.xlu1 %485  ;;  %v1816_v60 = vpop.xlane.xlu0 %488  ;;  %v579_v51 = vmul.f32 0.6931472, %v1163_v28  ;;  %1184 = vrcp.f32 %v483_v53 }
 0x16b   : > { %v1165_v44 = vpop.eup %1164  ;;  %1186 = vlog2.f32 %v1814_v26 }
 0x16c   : > { %v1167_v59 = vpop.eup %1166  ;;  %v581_v63 = vmul.f32 0.6931472, %v1165_v44  ;;  %v610_v24 = vsub.f32 %v579_v51, %v388_v41  ;;  %1188 = vrcp.f32 %v1814_v26 }
 0x16d   : > { %v1169_v49 = vpop.eup %1168  ;;  %1190 = vlog2.f32 %v1816_v60 }
 0x16e   : > { %v1818_v58 = vpop.xlane.xlu1 %491  ;;  %v1820_v62 = vpop.xlane.xlu0 %494  ;;  %v611_v19 = vsub.f32 %v581_v63, %v391_v16  ;;  %1192 = vrcp.f32 %v1816_v60 }
 0x16f   : > { %v1171_v61 = vpop.eup %1170  ;;  %1194 = vlog2.f32 %v1818_v58 }
 0x170   : > { %v1173_v1 = vpop.eup %1172  ;;  %v583_v20 = vmul.f32 0.6931472, %v1171_v61  ;;  %1196 = vrcp.f32 %v1818_v58 }
 0x171   : > { %v1175_v23 = vpop.eup %1174  ;;  %1198 = vlog2.f32 %v1820_v62 }
 0x172   : > { %v1822_v8 = vpop.xlane.xlu1 %497  ;;  %v1824_v9 = vpop.xlane.xlu0 %500  ;;  %v612_v40 = vsub.f32 %v583_v20, %v394_v21  ;;  %1200 = vrcp.f32 %v1820_v62 }
 0x173   : > { %v1177_v3 = vpop.eup %1176  ;;  %1202 = vlog2.f32 %v1822_v8 }
 0x174   : > { %v1179_v33 = vpop.eup %1178  ;;  %1204 = vrcp.f32 %v1822_v8  ;;  %v585_v8 = vmul.f32 0.6931472, %v1175_v23 }
 0x175   : > { %v1181_v31 = vpop.eup %1180  ;;  %1206 = vlog2.f32 %v1824_v9 }
 0x176   : > { %v1826_v13 = vpop.xlane.xlu1 %503  ;;  %v1828_v35 = vpop.xlane.xlu0 %506  ;;  %1208 = vrcp.f32 %v1824_v9  ;;  %v587_v9 = vmul.f32 0.6931472, %v1179_v33 }
 0x177   : > { %v1183_v22 = vpop.eup %1182  ;;  %1210 = vlog2.f32 %v1826_v13 }
 0x178   : > { %v1185_v37 = vpop.eup %1184  ;;  %1212 = vrcp.f32 %v1826_v13 }
 0x179   : > { %v1187_v41 = vpop.eup %1186  ;;  %1214 = vlog2.f32 %v1828_v35 }
 0x17a   : > { %v1830_v38 = vpop.xlane.xlu1 %509  ;;  %v1832_v47 = vpop.xlane.xlu0 %512  ;;  %1216 = vrcp.f32 %v1828_v35 }
 0x17b   : > { %v1189_v21 = vpop.eup %1188  ;;  %1218 = vrcp.f32 %v1830_v38 }
 0x17c   : > { %v1191_v52 = vpop.eup %1190  ;;  %1220 = vlog2.f32 %v1830_v38 }
 0x17d   : > { %v1193_v26 = vpop.eup %1192  ;;  %1222 = vrcp.f32 %v1832_v47 }
 0x17e   : > { %v532_v29 = vpop.xlane.xlu1 %531  ;;  %v535_v4 = vpop.xlane.xlu0 %534  ;;  %1224 = vlog2.f32 %v1832_v47 }
 0x17f   : > { %v642_v5 = vmul.f32 %v1167_v59, %v532_v29  ;;  %v643_v2 = vmul.f32 %v1169_v49, %v535_v4  ;;  %v1195_v58 = vpop.eup %1194 }
 0x180   : > { %v1197_v62 = vpop.eup %1196 }
 0x181   : > { %v658_v6 = vsub.f32 1.0, %v642_v5  ;;  %v659_v11 = vsub.f32 1.0, %v643_v2  ;;  %v1199_v28 = vpop.eup %1198 }
 0x182   : > { %v538_v27 = vpop.xlane.xlu1 %537  ;;  %v541_v34 = vpop.xlane.xlu0 %540 }
 0x183   : > { %v674_v17 = vmax.f32 %v658_v6, 0.0  ;;  %v675_v36 = vmax.f32 %v659_v11, 0.0  ;;  %v644_v42 = vmul.f32 %v1173_v1, %v538_v27  ;;  %v645_v32 = vmul.f32 %v1177_v3, %v541_v34  ;;  %v1201_v61 = vpop.eup %1200 }
 0x184   : > { %v1203_v6 = vpop.eup %1202  ;;  %v589_v11 = vmul.f32 0.6931472, %v1183_v22 }
 0x185   : > { %v690_v57 = vmul.f32 %v674_v17, %v610_v24  ;;  %v691_v14 = vmul.f32 %v675_v36, %v611_v19  ;;  %v660_v45 = vsub.f32 1.0, %v644_v42  ;;  %v661_v54 = vsub.f32 1.0, %v645_v32  ;;  %v1205_v35 = vpop.eup %1204 }
 0x186   : > { %v544_v46 = vpop.xlane.xlu1 %543  ;;  %v547_v30 = vpop.xlane.xlu0 %546  ;;  %v591_v24 = vmul.f32 0.6931472, %v1187_v41 }
 0x187   : > { %707 = vst.msk [vmem:[%s1835_s29] sm:$0xff] %vm706_vm0, %v690_v57  ;;  %708 = vst.msk [vmem:[%s1835_s29 + $0x8] sm:$0xff] %vm706_vm0, %v691_v14  ;;  %v676_v7 = vmax.f32 %v660_v45, 0.0  ;;  %v646_v16 = vmul.f32 %v1181_v31, %v544_v46  ;;  %v647_v50 = vmul.f32 %v1185_v37, %v547_v30  ;;  %v677_v44 = vmax.f32 %v661_v54, 0.0  ;;  %v1207_v27 = vpop.eup %1206 }
 0x188   : > { %v1209_v14 = vpop.eup %1208 }
 0x189   : > { %v692_v39 = vmul.f32 %v676_v7, %v612_v40  ;;  %v662_v60 = vsub.f32 1.0, %v646_v16  ;;  %v663_v59 = vsub.f32 1.0, %v647_v50  ;;  %v1211_v40 = vpop.eup %1210  ;;  %v599_v50 = vmul.f32 0.6931472, %v1203_v6 }
 0x18a   : > { %v550_v15 = vpop.xlane.xlu1 %549  ;;  %v553_v48 = vpop.xlane.xlu0 %552 }
 0x18b   : > { %709 = vst.msk [vmem:[%s1835_s29 + $0x10] sm:$0xff] %vm706_vm0, %v692_v39  ;;  %v648_v55 = vmul.f32 %v1189_v21, %v550_v15  ;;  %v649_v51 = vmul.f32 %v1193_v26, %v553_v48  ;;  %v678_v63 = vmax.f32 %v662_v60, 0.0  ;;  %v679_v34 = vmax.f32 %v663_v59, 0.0  ;;  %v1213_v7 = vpop.eup %1212 }
 0x18c   : > { %v593_v48 = vmul.f32 0.6931472, %v1191_v52 }
 0x18d   : > { %v664_v49 = vsub.f32 1.0, %v648_v55  ;;  %v665_v19 = vsub.f32 1.0, %v649_v51 }
 0x18e   : > { %v556_v12 = vpop.xlane.xlu1 %555  ;;  %v1844_v56 = vpop.xlane.xlu0 %558 }
 0x18f   : > { %v650_v5 = vmul.f32 %v1197_v62, %v556_v12  ;;  %v680_v17 = vmax.f32 %v664_v49, 0.0  ;;  %v651_v36 = vmul.f32 %v1201_v61, %v1844_v56  ;;  %v595_v12 = vmul.f32 0.6931472, %v1195_v58  ;;  %v1215_v56 = vpop.eup %1214 }
 0x190   : > { %v681_v23 = vmax.f32 %v665_v19, 0.0  ;;  %v1217_v32 = vpop.eup %1216 }
 0x191   : > { %v666_v45 = vsub.f32 1.0, %v650_v5  ;;  %v667_v3 = vsub.f32 1.0, %v651_v36 }
 0x192   : > { %v1850_v0 = vpop.xlane.xlu1 %561  ;;  %v1852_v10 = vpop.xlane.xlu0 %564 }
 0x193   : > { %v652_v46 = vmul.f32 %v1205_v35, %v1850_v0  ;;  %v653_v0 = vmul.f32 %v1209_v14, %v1852_v10  ;;  %v682_v37 = vmax.f32 %v666_v45, 0.0  ;;  %v597_v10 = vmul.f32 0.6931472, %v1199_v28 }
 0x194   : > { %v683_v55 = vmax.f32 %v667_v3, 0.0 }
 0x195   : > { %v668_v16 = vsub.f32 1.0, %v652_v46  ;;  %v669_v26 = vsub.f32 1.0, %v653_v0 }
 0x196   : > { %v1858_v18 = vpop.xlane.xlu1 %567  ;;  %v1860_v43 = vpop.xlane.xlu0 %570 }
 0x197   : > { %v654_v33 = vmul.f32 %v1213_v7, %v1858_v18  ;;  %v1219_v18 = vpop.eup %1218  ;;  %v655_v58 = vmul.f32 %v1217_v32, %v1860_v43  ;;  %v685_v43 = vmax.f32 %v669_v26, 0.0 }
 0x199   : > { %v670_v60 = vsub.f32 1.0, %v654_v33  ;;  %v671_v5 = vsub.f32 1.0, %v655_v58 }
 0x19a   : > { %v1866_v25 = vpop.xlane.xlu1 %573  ;;  %v1868_v53 = vpop.xlane.xlu0 %576 }
 0x19b   : > { %v656_v59 = vmul.f32 %v1219_v18, %v1866_v25 }
 0x19d   : > { %v672_v6 = vsub.f32 1.0, %v656_v59 }
 0x19e   : > { %v397_v29 = vpop.xlane.xlu1 %396  ;;  %v400_v4 = vpop.xlane.xlu0 %399 }
 0x19f   : > { %v613_v13 = vsub.f32 %v585_v8, %v397_v29  ;;  %v614_v2 = vsub.f32 %v587_v9, %v400_v4  ;;  %v1221_v9 = vpop.eup %1220  ;;  %v601_v29 = vmul.f32 0.6931472, %v1207_v27  ;;  %v603_v4 = vmul.f32 0.6931472, %v1211_v40 }
 0x1a0   : > { %v1223_v61 = vpop.eup %1222  ;;  %v607_v27 = vmul.f32 0.6931472, %v1221_v9 }
 0x1a1   : > { %v693_v1 = vmul.f32 %v677_v44, %v613_v13  ;;  %v694_v20 = vmul.f32 %v678_v63, %v614_v2  ;;  %v684_v44 = vmax.f32 %v668_v16, 0.0  ;;  %v686_v63 = vmax.f32 %v670_v60, 0.0 }
 0x1a2   : > { %v403_v42 = vpop.xlane.xlu1 %402  ;;  %v406_v57 = vpop.xlane.xlu0 %405  ;;  %v657_v25 = vmul.f32 %v1223_v61, %v1868_v53 }
 0x1a3   : > { %710 = vst.msk [vmem:[%s1835_s29 + $0x18] sm:$0xff] %vm706_vm0, %v693_v1  ;;  %711 = vst.msk [vmem:[%s1835_s29 + $0x20] sm:$0xff] %vm706_vm0, %v694_v20  ;;  %v615_v38 = vsub.f32 %v589_v11, %v403_v42  ;;  %v616_v30 = vsub.f32 %v591_v24, %v406_v57  ;;  %v605_v24 = vmul.f32 0.6931472, %v1215_v56  ;;  %v688_v42 = vmax.f32 %v672_v6, 0.0 }
 0x1a4   : > { %v673_v53 = vsub.f32 1.0, %v657_v25 }
 0x1a5   : > { %v695_v39 = vmul.f32 %v679_v34, %v615_v38  ;;  %v696_v15 = vmul.f32 %v680_v17, %v616_v30  ;;  %v1225_v34 = vpop.eup %1224  ;;  %v687_v17 = vmax.f32 %v671_v5, 0.0 }
 0x1a6   : > { %v409_v31 = vpop.xlane.xlu1 %408  ;;  %v412_v22 = vpop.xlane.xlu0 %411  ;;  %v609_v38 = vmul.f32 0.6931472, %v1225_v34  ;;  %v689_v40 = vmax.f32 %v673_v53, 0.0 }
 0x1a7   : > { %712 = vst.msk [vmem:[%s1835_s29 + $0x28] sm:$0xff] %vm706_vm0, %v695_v39  ;;  %713 = vst.msk [vmem:[%s1835_s29 + $0x30] sm:$0xff] %vm706_vm0, %v696_v15  ;;  %v617_v41 = vsub.f32 %v593_v48, %v409_v31  ;;  %v618_v21 = vsub.f32 %v595_v12, %v412_v22 }
 0x1a9   : > { %v697_v52 = vmul.f32 %v681_v23, %v617_v41  ;;  %v698_v54 = vmul.f32 %v682_v37, %v618_v21 }
 0x1aa   : > { %v415_v62 = vpop.xlane.xlu1 %414  ;;  %v418_v8 = vpop.xlane.xlu0 %417 }
 0x1ab   : > { %714 = vst.msk [vmem:[%s1835_s29 + $0x38] sm:$0xff] %vm706_vm0, %v697_v52  ;;  %715 = vst.msk [vmem:[%s1835_s29 + $0x40] sm:$0xff] %vm706_vm0, %v698_v54  ;;  %v619_v47 = vsub.f32 %v597_v10, %v415_v62  ;;  %v620_v28 = vsub.f32 %v599_v50, %v418_v8 }
 0x1ad   : > { %v699_v49 = vmul.f32 %v683_v55, %v619_v47  ;;  %v700_v51 = vmul.f32 %v684_v44, %v620_v28 }
 0x1ae   : > { %v421_v13 = vpop.xlane.xlu1 %420  ;;  %v424_v2 = vpop.xlane.xlu0 %423 }
 0x1af   : > { %716 = vst.msk [vmem:[%s1835_s29 + $0x48] sm:$0xff] %vm706_vm0, %v699_v49  ;;  %717 = vst.msk [vmem:[%s1835_s29 + $0x50] sm:$0xff] %vm706_vm0, %v700_v51  ;;  %v621_v11 = vsub.f32 %v601_v29, %v421_v13  ;;  %v622_v35 = vsub.f32 %v603_v4, %v424_v2 }
 0x1b1   : > { %v701_v1 = vmul.f32 %v685_v43, %v621_v11  ;;  %v702_v20 = vmul.f32 %v686_v63, %v622_v35 }
 0x1b2   : > { %v427_v19 = vpop.xlane.xlu1 %426  ;;  %v430_v36 = vpop.xlane.xlu0 %429 }
 0x1b3   : > { %718 = vst.msk [vmem:[%s1835_s29 + $0x58] sm:$0xff] %vm706_vm0, %v701_v1  ;;  %719 = vst.msk [vmem:[%s1835_s29 + $0x60] sm:$0xff] %vm706_vm0, %v702_v20  ;;  %v623_v57 = vsub.f32 %v605_v24, %v427_v19  ;;  %v624_v14 = vsub.f32 %v607_v27, %v430_v36 }
 0x1b5   : > { %v703_v45 = vmul.f32 %v687_v17, %v623_v57  ;;  %v704_v46 = vmul.f32 %v688_v42, %v624_v14  ;;  %729 = sbr.rel (!%p1355_p4) target bundleno = 493 (0x1ed), region = 32 }
 0x1b6   : > { %v433_v30 = vpop.xlane.xlu1 %432 }
 0x1b7   : > { %720 = vst.msk [vmem:[%s1835_s29 + $0x68] sm:$0xff] %vm706_vm0, %v703_v45  ;;  %721 = vst.msk [vmem:[%s1835_s29 + $0x70] sm:$0xff] %vm706_vm0, %v704_v46  ;;  %v625_v7 = vsub.f32 %v609_v38, %v433_v30 }
 0x1b9   : > { %v705_v39 = vmul.f32 %v689_v40, %v625_v7 }
 0x1bb   : > { %722 = vst.msk [vmem:[%s1835_s29 + $0x78] sm:$0xff] %vm706_vm0, %v705_v39 }
 0x1bc   : > { %s2021_s30 = smov (!%p732_p8, %s731_s30), 16 }
 0x1bd   : > { %s1021_s7 = sshll.u32 %s2021_s30, 7 }
 0x1be   : > { %p1024_p9 = scmp.eq.s32.totalorder %s1021_s7, 0 }
 0x1bf   : > { %s1923_s8 = sshrl.u32 (!%p1024_p9), %s2021_s30, 4 }
 0x1c0   : > { %740 = sbr.rel (%p1024_p9) target bundleno = 493 (0x1ed), region = 36  ;;  %p1025_p10 = scmp.le.s32.totalorder (!%p1024_p9), %s1923_s8, 0 }
 0x1c7   : > { %960 = sbr.rel (%p1025_p10) target bundleno = 472 (0x1d8), region = 115  ;;  %s2014_s9 = smov (!%p1025_p10), %s1917_s6 }
 0x1c8   : > { %s2015_s11 = smov (!%p1025_p10), %s1835_s29  ;;  %s1932_s12 = smov (!%p1025_p10), 0  }
 0x1c9   : > { %s1934_s14 = smov (!%p1025_p10), 0  }
 0x1ce LB: >> { %v832_v15 = vld [vmem:[%s1288_s11] sm:$0xff]  ;;  %v834_v48 = vld [vmem:[%s1288_s11 + $0x8] sm:$0xff]  ;;  %v836_v12 = vld [vmem:[%s1288_s11 + $0x10] sm:$0xff]  ;;  %s864_s15 = sadd.s32 1, %s1292_s12  ;;  %s826_s14 = sadd.s32 1, %s1296_s14   ;;  %s1296_s14 = sphi %s1934_s14, %s826_s14   ;;  %s1292_s12 = sphi %s1932_s12, %s2016_s12   ;;  %s1288_s11 = sphi %s2015_s11, %s869_s11   ;;  %s1284_s9 = sphi %s2014_s9, %s870_s9  }
 0x1cf   : >> { %833 = vst [vmem:[%s1284_s9] sm:$0xff] %v832_v15  ;;  %835 = vst [vmem:[%s1284_s9 + $0x8] sm:$0xff] %v834_v48  ;;  %v838_v56 = vld [vmem:[%s1288_s11 + $0x18] sm:$0xff]  ;;  %v840_v23 = vld [vmem:[%s1288_s11 + $0x20] sm:$0xff]  ;;  %p865_p11 = scmp.ge.s32.totalorder %s864_s15, %s1923_s8  ;;  %p825_p12 = scmp.ge.s32.totalorder %s826_s14, %s1923_s8 }
 0x1d0   : >> { %837 = vst [vmem:[%s1284_s9 + $0x10] sm:$0xff] %v836_v12  ;;  %v842_v3 = vld [vmem:[%s1288_s11 + $0x28] sm:$0xff]  ;;  %839 = vst [vmem:[%s1284_s9 + $0x18] sm:$0xff] %v838_v56  ;;  %v844_v0 = vld [vmem:[%s1288_s11 + $0x30] sm:$0xff] }
 0x1d1   : >> { %841 = vst [vmem:[%s1284_s9 + $0x20] sm:$0xff] %v840_v23  ;;  %843 = vst [vmem:[%s1284_s9 + $0x28] sm:$0xff] %v842_v3  ;;  %v846_v33 = vld [vmem:[%s1288_s11 + $0x38] sm:$0xff]  ;;  %v848_v31 = vld [vmem:[%s1288_s11 + $0x40] sm:$0xff]  ;;  %s2023_s15 = smov (%p865_p11, %s864_s15), 0  ;;  %828 = sbr.rel (!%p825_p12) target bundleno = 462 (0x1ce), region = 121 }
 0x1d2   : >> { %845 = vst [vmem:[%s1284_s9 + $0x30] sm:$0xff] %v844_v0  ;;  %847 = vst [vmem:[%s1284_s9 + $0x38] sm:$0xff] %v846_v33  ;;  %v850_v22 = vld [vmem:[%s1288_s11 + $0x48] sm:$0xff]  ;;  %v852_v32 = vld [vmem:[%s1288_s11 + $0x50] sm:$0xff]  ;;  %s1026_s17 = sshll.u32 %s2023_s15, 7  ;;  %s2016_s12 = smov %s2023_s15 }
 0x1d3   : >> { %849 = vst [vmem:[%s1284_s9 + $0x40] sm:$0xff] %v848_v31  ;;  %v854_v37 = vld [vmem:[%s1288_s11 + $0x58] sm:$0xff]  ;;  %851 = vst [vmem:[%s1284_s9 + $0x48] sm:$0xff] %v850_v22  ;;  %v856_v16 = vld [vmem:[%s1288_s11 + $0x60] sm:$0xff] }
 0x1d4   : >> { %853 = vst [vmem:[%s1284_s9 + $0x50] sm:$0xff] %v852_v32  ;;  %855 = vst [vmem:[%s1284_s9 + $0x58] sm:$0xff] %v854_v37  ;;  %v858_v41 = vld [vmem:[%s1288_s11 + $0x68] sm:$0xff]  ;;  %v860_v21 = vld [vmem:[%s1288_s11 + $0x70] sm:$0xff] }
 0x1d5   : >> { %857 = vst [vmem:[%s1284_s9 + $0x60] sm:$0xff] %v856_v16  ;;  %859 = vst [vmem:[%s1284_s9 + $0x68] sm:$0xff] %v858_v41  ;;  %v862_v52 = vld [vmem:[%s1288_s11 + $0x78] sm:$0xff]  ;;  %s869_s11 = scalar_lea.vmem %s1835_s29, %s1026_s17 [#allocation2]  }
 0x1d6   : >> { %861 = vst [vmem:[%s1284_s9 + $0x70] sm:$0xff] %v860_v21  ;;  %863 = vst [vmem:[%s1284_s9 + $0x78] sm:$0xff] %v862_v52  ;;  %s870_s9 = scalar_lea.vmem %s1917_s6, %s1026_s17  }
 0x1d8 PF: > { %s1992_s18 = sand.u32 15, %s2021_s30   ;;  %s1037_s19 = sshll.u32 %s1923_s8, 7 }
 0x1d9   : > { %s875_s20 = scalar_lea.vmem %s1835_s29, %s1037_s19 [#allocation2]   ;;  %s877_s21 = scalar_lea.vmem %s1917_s6, %s1037_s19  }
 0x1da   : > { %p1031_p13 = scmp.le.s32.totalorder %s1992_s18, 0 }
 0x1db   : > { %s1298_s22 = smov (!%p1031_p13), %s877_s21   ;;  %s1302_s23 = smov (!%p1031_p13), %s875_s20  }
 0x1dc   : > { %974 = sbr.rel (%p1031_p13) target bundleno = 493 (0x1ed), region = 126  ;;  %s1306_s24 = smov (!%p1031_p13), 0  }
 0x1dd   : > { %s1310_s25 = smov (!%p1031_p13), 0  }
 0x1e3 LB: >> { %v887_v54 = vld [vmem:[%s1304_s23] sm:$0xff]  ;;  %s889_s26 = sadd.s32 1, %s1308_s24  ;;  %s881_s25 = sadd.s32 1, %s1312_s25   ;;  %s1312_s25 = sphi %s1310_s25, %s881_s25   ;;  %s1308_s24 = sphi %s1306_s24, %s1307_s24   ;;  %s1304_s23 = sphi %s1302_s23, %s894_s23   ;;  %s1300_s22 = sphi %s1298_s22, %s895_s22  }
 0x1e4   : >> { %888 = vst [vmem:[%s1300_s22] sm:$0xff] %v887_v54  ;;  %p890_p0 = scmp.ge.s32.totalorder %s889_s26, %s1992_s18  ;;  %p880_p1 = scmp.ge.s32.totalorder %s881_s25, %s1992_s18 }
 0x1e6   : >> { %s2025_s26 = smov (%p890_p0, %s889_s26), 0  ;;  %883 = sbr.rel (!%p880_p1) target bundleno = 483 (0x1e3), region = 132 }
 0x1e7   : >> { %s1032_s27 = sshll.u32 %s2025_s26, 3  ;;  %s1307_s24 = smov %s2025_s26  }
 0x1e8   : >> { %s894_s23 = scalar_lea.vmem %s875_s20, %s1032_s27 [#allocation2]   ;;  %s895_s22 = scalar_lea.vmem %s877_s21, %s1032_s27  }
 0x1ed PF: > { %p9_p2 = scmp.ge.s32.totalorder %s1345_s13, 4   ;;  %s2017_s9 = smov %s1276_s10 }
 0x1ee   : > { %s2018_s10 = smov %s1353_s16  ;;  %s2019_s11 = smov %s1345_s13 }
 0x1ef   :  { %11 = sbr.rel (!%p9_p2) target bundleno = 2 (0x2), region = 143 }

</bundles_post_ra>
